<compile_context>
chip_gen: v7x
topology: tpu7x:2x2x1
jax: 0.10.0
libtpu: 0.0.40
codegen_flags: <defaults>
</compile_context>

<pallas_src>
import jax
import jax.numpy as jnp
import numpy as np
from jax.experimental import pallas as pl
from jax.experimental.pallas import tpu as pltpu


_WIDE_LANES = 1024                # wide lane-dense last dim (8 vregs per row)
_TILE_BYTES = 2 << 20             # ~2 MiB/tile -> ~8 MiB with double buffering (fits v5e 16 MiB scoped default)
_GRIDLESS_MAX_BYTES = 4 << 20     # single resident full block up to 4 MiB (in+out ~= 8 MiB VMEM)


def _copy_kernel(c_ref, o_ref):
    # Trivial pass-through: emit the stored constant through VMEM once.
    o_ref[...] = c_ref[...]


def _passthrough_full_block(x: jax.Array) -> jax.Array:
    """Gridless full-array copy (block == full dims, (8,128) rule waived)."""
    return pl.pallas_call(
        _copy_kernel,
        out_shape=jax.ShapeDtypeStruct(x.shape, x.dtype),
    )(x)


def _passthrough_tiled(x2d: jax.Array, tile_rows: int) -> jax.Array:
    """Row-tiled copy for large constants; ragged last block masked by Pallas."""
    rows, cols = x2d.shape
    return pl.pallas_call(
        _copy_kernel,
        out_shape=jax.ShapeDtypeStruct((rows, cols), x2d.dtype),
        grid=(pl.cdiv(rows, tile_rows),),
        in_specs=[pl.BlockSpec((tile_rows, cols), lambda i: (i, 0))],
        out_specs=pl.BlockSpec((tile_rows, cols), lambda i: (i, 0)),
        compiler_params=pltpu.CompilerParams(
            dimension_semantics=("parallel",)
        ),
    )(x2d)


def _materialize(arr: jax.Array) -> jax.Array:
    """One-time Pallas pass-through of the stored constant (traced under jit)."""
    nbytes = arr.size * arr.dtype.itemsize

    if nbytes <= _GRIDLESS_MAX_BYTES:
        # No reshape / padding passes at all: copy the array as one full block.
        x = arr.reshape(1, 1) if arr.ndim == 0 else arr
        return _passthrough_full_block(x).reshape(arr.shape)

    # Large constant: wide lane-dense slab, big tiles, ragged last block masked.
    flat = arr.reshape(-1)
    n = flat.size
    pad = (-n) % _WIDE_LANES
    if pad:
        flat = jnp.pad(flat, (0, pad))          # < one row of padding, fused under jit
    rows = flat.size // _WIDE_LANES
    tile_rows = max(8, (_TILE_BYTES // (_WIDE_LANES * arr.dtype.itemsize)) // 8 * 8)
    tile_rows = min(tile_rows, rows)
    out2d = _passthrough_tiled(flat.reshape(rows, _WIDE_LANES), tile_rows)
    out = out2d.reshape(-1)
    if pad:
        out = out[:n]
    return out.reshape(arr.shape)


def _is_array_like(v) -> bool:
    """Values we normalize to a jax array; strings & misc objects bypass."""
    if isinstance(v, str):
        return False
    if isinstance(v, (bool, int, float, complex)):
        return True
    if isinstance(v, (jax.Array, np.ndarray, np.generic)):
        return np.dtype(v.dtype).kind in "biufc"
    return False


def _kernel_supported(dtype) -> bool:
    # Route only float / integer constants through the Pallas copy.
    # TODO(synk): bool / complex constants have no clean TPU Pallas copy path;
    # they are cached as plain device arrays instead.
    return jnp.issubdtype(dtype, jnp.floating) or jnp.issubdtype(dtype, jnp.integer)


class StrModule:
    """JAX/Pallas port of autogllight's StrModule.

    forward(*args, **kwargs) ignores every input and returns the stored value.
    """

    def __init__(self, lambd):
        self.str = lambd
        self._is_array = _is_array_like(lambd)
        self._cached = None
        if self._is_array:
            arr = jnp.asarray(lambd)
            if _kernel_supported(arr.dtype):
                # Pallas pass-through exactly once, under a single jit so the
                # (rare) pad/reshape/slice compile together with the kernel.
                self._cached = jax.jit(_materialize)(arr)
            else:
                self._cached = arr

    def __call__(self, *args, **kwargs):
        return self.forward(*args, **kwargs)

    def forward(self, *args, **kwargs):
        if self._is_array:
            # Zero-cost return of the cached device constant.
            return self._cached
        # Non-tensor constant (e.g. a string): return as-is, like the reference.
        return self.str

    def __repr__(self):
        return "{}({})".format(self.__class__.__name__, self.str)


if __name__ == "__main__":
    key = jax.random.PRNGKey(0)
    k_const, k_odd, k_big, k_x = jax.random.split(key, 4)

    # Inputs that the forward pass must ignore (NCHW-style, small shapes).
    x = jax.random.normal(k_x, (2, 4, 16, 16), dtype=jnp.float32)

    # 1) Lane-aligned small constant -> gridless full-block pass-through.
    stored_const = jax.random.normal(k_const, (8, 128), dtype=jnp.float32)
    mod_arr = StrModule(stored_const)
    out = jax.block_until_ready(mod_arr(x, some_kwarg=123))
    assert out.shape == stored_const.shape
    assert jnp.allclose(out, stored_const), "Pallas pass-through mismatch (aligned)"
    # Repeated forward() calls are cached returns of the same device array.
    assert mod_arr(x) is out

    # 2) Oddly shaped constant (full-array block: no padding, no reshape).
    odd_const = jax.random.normal(k_odd, (5, 7), dtype=jnp.float32)
    mod_odd = StrModule(odd_const)
    out_odd = jax.block_until_ready(mod_odd(x))
    assert out_odd.shape == odd_const.shape
    assert jnp.allclose(out_odd, odd_const), "Pallas pass-through mismatch (odd)"

    # 3) Python numeric scalar constant (0-d -> (1,1) block -> back).
    mod_scalar = StrModule(3.5)
    out_scalar = jax.block_until_ready(mod_scalar(x))
    assert jnp.allclose(out_scalar, jnp.float32(3.5))

    # 4) Large constant -> wide lane-dense tiled path with ragged last block.
    big_const = jax.random.normal(k_big, (1300, 1100), dtype=jnp.float32)  # ~5.7 MB
    mod_big = StrModule(big_const)
    out_big = jax.block_until_ready(mod_big(x))
    assert out_big.shape == big_const.shape
    assert jnp.allclose(out_big, big_const), "Pallas pass-through mismatch (tiled)"

    # 5) String-valued stored constant, matching the typical NAS usage.
    mod_str = StrModule("zero")
    assert mod_str(x) == "zero"
    assert repr(mod_str) == "StrModule(zero)"

    print("KERNEL_OK")
</pallas_src>

<mosaic_0001>
module attributes {stable_mosaic.version = 11 : i64} {
  func.func @_copy_kernel(%arg0: memref<8x128xf32, #tpu.memory_space<vmem>>, %arg1: memref<8x128xf32, #tpu.memory_space<vmem>>) attributes {dimension_semantics = [], scalar_prefetch = 0 : i64, scratch_operands = 0 : i64, tpu.core_type = #tpu.core_type<tc>} {
    %c0 = arith.constant 0 : index
    %c0_0 = arith.constant 0 : index
    %0 = vector.load %arg0[%c0, %c0_0] : memref<8x128xf32, #tpu.memory_space<vmem>>, vector<8x128xf32>
    %c0_1 = arith.constant 0 : index
    %c0_2 = arith.constant 0 : index
    %1 = vector.load %arg1[%c0_1, %c0_2] : memref<8x128xf32, #tpu.memory_space<vmem>>, vector<8x128xf32>
    tpu.vector_store %arg1[%c0_1, %c0_2], %0 {strides = array<i32>} : memref<8x128xf32, #tpu.memory_space<vmem>>, vector<8x128xf32>,
    return
  }
}

</mosaic_0001>

<bundles_post_ra>
// kernel: _materialize.1
= control target key start
LH: loop header
LB: loop body
LE: loop exit
PB: predicated region body
PF: predicated region fallthrough
CT: control target
= control target key end

     0   :  { %6 = vsyncpa [#allocation3], 0  ;;  %s124_s0 = inlined_call_operand.hbm [shape: f32[8,128], index: 0, kind: input, shape index: {}]   ;;  %s125_s1 = inlined_call_operand.hbm [shape: f32[8,128], index: 1, kind: output, shape index: {}]  }
   0x1   :  { %7 = vsyncpa [#allocation4], 0  ;;  %s88_s6 = smov [#allocation2]   ;;  %s40_s10 = scalar_lea.hbm %s124_s0, 128 }
   0x2   :  { %s14_s7 = sshll.u32 %s88_s6, 4  ;;  %p41_p0 = scmp.ne.s32.totalorder %s124_s0, %s40_s10  ;;  %s15_s7 = int_to_ptr.vmem [resolvable:$true] %s14_s7 }
   0x3   :  { %p44_p1 = scmp.lt.u32.totalorder %s40_s10, %s124_s0 }
   0x5   :  { %p46_p2 = pnand %p44_p1, %p41_p0 }
   0x7   :  { %49 = shalt.err (!%p46_p2)
}
   0x8   :  { %s50_s15 = scalar_lea.vmem %s15_s7, 128  ;;  %p55_p4 = scmp.lt.s32.totalorder %s15_s7, %s15_s7 }
   0x9   :  { %p51_p3 = scmp.ne.s32.totalorder %s15_s7, %s50_s15  ;;  %p56_p5 = scmp.lt.s32.totalorder %s50_s15, %s50_s15 }
   0xb   :  { %p57_p6 = por %p56_p5, %p55_p4 }
   0xd   :  { %p58_p7 = pnand %p57_p6, %p51_p3 }
   0xf   :  { %61 = shalt.err (!%p58_p7)
}
  0x10   :  { %17 = dma.hbm_to_vmem [thread:$0]  %s124_s0, 128, %s15_s7, [#allocation3]  }
  0x11   :  { %84 = dma.done.wait [#allocation3], 128  }
  0x12   :  { %85 = vsyncadd [#allocation3], 4294967168  ;;  %s89_s18 = smov [#allocation5]   ;;  %v21_v0 = vld [vmem:[#allocation2] sm:$0xff] }
  0x13   :  { %s29_s19 = sshll.u32 %s89_s18, 4  ;;  %22 = vst [vmem:[#allocation5] sm:$0xff] %v21_v0  ;;  %s30_s19 = int_to_ptr.vmem [resolvable:$true] %s29_s19 }
  0x14   :  { %s62_s20 = scalar_lea.vmem %s30_s19, 128  ;;  %p67_p9 = scmp.lt.s32.totalorder %s30_s19, %s30_s19 }
  0x15   :  { %p63_p8 = scmp.ne.s32.totalorder %s30_s19, %s62_s20  ;;  %p68_p10 = scmp.lt.s32.totalorder %s62_s20, %s62_s20 }
  0x17   :  { %p69_p11 = por %p68_p10, %p67_p9 }
  0x19   :  { %p70_p12 = pnand %p69_p11, %p63_p8 }
  0x1b   :  { %73 = shalt.err (!%p70_p12)
}
  0x1c   :  { %s74_s23 = scalar_lea.hbm %s125_s1, 128 }
  0x1d   :  { %p75_p13 = scmp.ne.s32.totalorder %s125_s1, %s74_s23  ;;  %p78_p0 = scmp.lt.u32.totalorder %s74_s23, %s125_s1 }
  0x1f   :  { %p80_p1 = pnand %p78_p0, %p75_p13 }
  0x21   :  { %83 = shalt.err (!%p80_p1)
}
  0x22   :  { %32 = dma.vmem_to_hbm [thread:$0]  %s30_s19, 128, %s125_s1, [#allocation4]  }
  0x23   :  { %86 = dma.done.wait [#allocation4], 128  }
  0x24   :  { %87 = vsyncadd [#allocation4], 4294967168 }
  0x25   :  { %36 = vsyncpa [#allocation3], 1 }
  0x26   :  { %37 = vsyncpa [#allocation4], 1 }

</bundles_post_ra>
